<compile_context>
chip_gen: v6e
topology: v6e:2x2x1
jax: 0.10.0
libtpu: 0.0.40
codegen_flags: <defaults>
</compile_context>

<pallas_src>
import jax
import jax.numpy as jnp
from jax.experimental import pallas as pl
from jax.experimental.pallas import tpu as pltpu

HEAD_W = 8  # packed head width: [p0, p1, value, 0, 0, 0, 0, 0]


def _policy_kernel(x_ref, w1_ref, b1_ref, wh_ref, bh_ref, out_ref):
    x = x_ref[...]                                   # (TB, 4)   f32
    w1 = w1_ref[...]                                 # (4, 128)  f32

    # affine1: Linear(4 -> 128) + ReLU, done on the VPU as 4 broadcast FMAs.
    # (double ReLU in the torch model collapses to a single ReLU)
    h = jnp.broadcast_to(b1_ref[...], (x.shape[0], w1.shape[1]))
    for i in range(x.shape[1]):                      # static, unrolled (4 iters)
        h = h + x[:, i:i + 1] * w1[i:i + 1, :]
    h = jnp.maximum(h, 0.0)                          # (TB, 128)

    # Fused heads: one narrow MXU matmul.
    #   lane 0..1 = action logits, lane 2 = state value, lanes 3..7 = exactly 0
    head = jnp.dot(h, wh_ref[...], preferred_element_type=jnp.float32) + bh_ref[...]  # (TB, 8)

    # 2-class softmax via sigmoids of the logit difference.  p1 is computed
    # directly as sigmoid(-d) (not 1 - p0) so it never flushes to 0 for large
    # gaps and log(action_prob) stays finite.
    d = head[:, 0:1] - head[:, 1:2]                  # (TB, 1)
    p0 = 1.0 / (1.0 + jnp.exp(-d))
    p1 = 1.0 / (1.0 + jnp.exp(d))

    # Packed output slab: overwrite lanes 0/1 with probs; lane 2 is already the
    # value and lanes 3..7 are already 0 (zero-padded head columns/bias).
    lane = jax.lax.broadcasted_iota(jnp.int32, head.shape, 1)
    out_ref[...] = jnp.where(lane == 0, p0, jnp.where(lane == 1, p1, head))


def fuse_params(params):
    """One-time (outside the hot path) fusion of the two heads into a packed
    (H, 8) weight and (1, 8) bias: cols 0..1 = action head, col 2 = value head."""
    w1, b1, wa, ba, wv, bv = params
    H = w1.shape[1]
    w_head = jnp.zeros((H, HEAD_W), jnp.float32)
    w_head = w_head.at[:, 0:2].set(wa)
    w_head = w_head.at[:, 2:3].set(wv)
    b_head = jnp.zeros((1, HEAD_W), jnp.float32)
    b_head = b_head.at[:, 0:2].set(ba)
    b_head = b_head.at[:, 2:3].set(bv)
    return (w1, b1, w_head, b_head)


def policy_forward(x, fused_params):
    """x: (B, 4) f32. Returns (action_prob (B, 2), state_values (B, 1))."""
    w1, b1, w_head, b_head = fused_params
    B, F = x.shape
    H = w1.shape[1]                                  # 128
    W = w_head.shape[1]                              # 8

    # Row tile: single grid step for small B; at large B the grid is tiled at
    # 2048 rows/step (amortizes ~0.35us/step) and the "parallel" batch axis can
    # shard across TensorCores, with weights VMEM-resident (constant index maps).
    TB = min(2048, max(8, pl.cdiv(B, 8) * 8))        # multiple of 8
    Bp = pl.cdiv(B, TB) * TB
    if Bp != B:
        x = jnp.pad(x, ((0, Bp - B), (0, 0)))

    out = pl.pallas_call(
        _policy_kernel,
        out_shape=jax.ShapeDtypeStruct((Bp, W), jnp.float32),
        grid=(Bp // TB,),
        in_specs=[
            pl.BlockSpec((TB, F), lambda i: (i, 0)),   # x tile
            pl.BlockSpec((F, H), lambda i: (0, 0)),    # w1 (resident)
            pl.BlockSpec((1, H), lambda i: (0, 0)),    # b1 (resident)
            pl.BlockSpec((H, W), lambda i: (0, 0)),    # fused head weight (resident)
            pl.BlockSpec((1, W), lambda i: (0, 0)),    # fused head bias (resident)
        ],
        out_specs=pl.BlockSpec((TB, W), lambda i: (i, 0)),
        compiler_params=pltpu.CompilerParams(
            dimension_semantics=("parallel",)),
    )(x, w1, b1, w_head, b_head)

    out = out[:B]
    return out[:, 0:2], out[:, 2:3]


def init_params(key):
    """Deterministic init mimicking torch.nn.Linear default (U[-1/sqrt(fan_in), +])."""
    def linear(key, fan_in, fan_out):
        k_w, k_b = jax.random.split(key)
        bound = 1.0 / jnp.sqrt(fan_in)
        # stored as (in, out) so the kernel computes x @ W
        w = jax.random.uniform(k_w, (fan_in, fan_out), jnp.float32, -bound, bound)
        b = jax.random.uniform(k_b, (1, fan_out), jnp.float32, -bound, bound)
        return w, b

    k1, k2, k3 = jax.random.split(key, 3)
    w1, b1 = linear(k1, 4, 128)    # affine1
    wa, ba = linear(k2, 128, 2)    # action_head
    wv, bv = linear(k3, 128, 1)    # value_head
    return (w1, b1, wa, ba, wv, bv)


def _reference(x, params):
    w1, b1, wa, ba, wv, bv = params
    h = jnp.maximum(x @ w1 + b1, 0.0)
    logits = h @ wa + ba
    probs = jax.nn.softmax(logits, axis=-1)
    vals = h @ wv + bv
    return probs, vals


if __name__ == "__main__":
    key = jax.random.PRNGKey(0)
    k_params, k_x1, k_x2 = jax.random.split(key, 3)

    params = init_params(k_params)
    fused = fuse_params(params)            # hoisted one-time head fusion
    forward = jax.jit(policy_forward)

    # Small batch (CartPole-like): single grid step, pure-latency regime.
    B = 8
    x = jax.random.normal(k_x1, (B, 4), jnp.float32)
    probs, vals = forward(x, fused)
    jax.block_until_ready((probs, vals))

    ref_probs, ref_vals = _reference(x, params)
    assert probs.shape == (B, 2) and vals.shape == (B, 1)
    assert jnp.allclose(probs, ref_probs, atol=1e-5, rtol=1e-5)
    assert jnp.allclose(vals, ref_vals, atol=1e-5, rtol=1e-5)
    assert jnp.allclose(jnp.sum(probs, axis=-1), 1.0, atol=1e-5)
    assert bool(jnp.all(jnp.isfinite(jnp.log(probs + 0.0))))

    # Larger batch: exercises row padding + multi-step grid path.
    B2 = 3000
    x2 = jax.random.normal(k_x2, (B2, 4), jnp.float32)
    probs2, vals2 = forward(x2, fused)
    jax.block_until_ready((probs2, vals2))
    ref_probs2, ref_vals2 = _reference(x2, params)
    assert probs2.shape == (B2, 2) and vals2.shape == (B2, 1)
    assert jnp.allclose(probs2, ref_probs2, atol=1e-5, rtol=1e-5)
    assert jnp.allclose(vals2, ref_vals2, atol=1e-5, rtol=1e-5)

    print("KERNEL_OK")
</pallas_src>

<mosaic_0001>
module attributes {stable_mosaic.version = 11 : i64} {
  func.func @_policy_kernel(%arg0: i32, %arg1: memref<8x4xf32, #tpu.memory_space<vmem>>, %arg2: memref<4x128xf32, #tpu.memory_space<vmem>>, %arg3: memref<1x128xf32, #tpu.memory_space<vmem>>, %arg4: memref<128x8xf32, #tpu.memory_space<vmem>>, %arg5: memref<1x8xf32, #tpu.memory_space<vmem>>, %arg6: memref<8x8xf32, #tpu.memory_space<vmem>>) attributes {dimension_semantics = [#tpu.dimension_semantics<parallel>], iteration_bounds = array<i64: 1>, scalar_prefetch = 0 : i64, scratch_operands = 0 : i64, tpu.core_type = #tpu.core_type<tc>, window_params = [{transform_indices = @transform_0, window_bounds = array<i64: 8, 4>}, {pipeline_mode = #tpu.pipeline_mode<synchronous>, transform_indices = @transform_1, window_bounds = array<i64: 4, 128>}, {pipeline_mode = #tpu.pipeline_mode<synchronous>, transform_indices = @transform_2, window_bounds = array<i64: 1, 128>}, {pipeline_mode = #tpu.pipeline_mode<synchronous>, transform_indices = @transform_3, window_bounds = array<i64: 128, 8>}, {pipeline_mode = #tpu.pipeline_mode<synchronous>, transform_indices = @transform_4, window_bounds = array<i64: 1, 8>}, {transform_indices = @transform_5, window_bounds = array<i64: 8, 8>}]} {
    %c0 = arith.constant 0 : index
    %c0_0 = arith.constant 0 : index
    %0 = vector.load %arg1[%c0, %c0_0] : memref<8x4xf32, #tpu.memory_space<vmem>>, vector<8x4xf32>
    %c0_1 = arith.constant 0 : index
    %c0_2 = arith.constant 0 : index
    %1 = vector.load %arg2[%c0_1, %c0_2] : memref<4x128xf32, #tpu.memory_space<vmem>>, vector<4x128xf32>
    %c0_3 = arith.constant 0 : index
    %c0_4 = arith.constant 0 : index
    %2 = vector.load %arg3[%c0_3, %c0_4] : memref<1x128xf32, #tpu.memory_space<vmem>>, vector<1x128xf32>
    %3 = vector.shape_cast %2 : vector<1x128xf32> to vector<1x128xf32>
    %4 = vector.broadcast %3 : vector<1x128xf32> to vector<8x128xf32>
    %5 = vector.extract_strided_slice %0 {offsets = [0, 0], sizes = [8, 1], strides = [1, 1]} : vector<8x4xf32> to vector<8x1xf32>
    %6 = vector.extract_strided_slice %1 {offsets = [0, 0], sizes = [1, 128], strides = [1, 1]} : vector<4x128xf32> to vector<1x128xf32>
    %7 = vector.broadcast %5 : vector<8x1xf32> to vector<8x128xf32>
    %8 = vector.broadcast %6 : vector<1x128xf32> to vector<8x128xf32>
    %9 = arith.mulf %7, %8 : vector<8x128xf32>
    %10 = arith.addf %4, %9 : vector<8x128xf32>
    %11 = vector.extract_strided_slice %0 {offsets = [0, 1], sizes = [8, 1], strides = [1, 1]} : vector<8x4xf32> to vector<8x1xf32>
    %12 = vector.extract_strided_slice %1 {offsets = [1, 0], sizes = [1, 128], strides = [1, 1]} : vector<4x128xf32> to vector<1x128xf32>
    %13 = vector.broadcast %11 : vector<8x1xf32> to vector<8x128xf32>
    %14 = vector.broadcast %12 : vector<1x128xf32> to vector<8x128xf32>
    %15 = arith.mulf %13, %14 : vector<8x128xf32>
    %16 = arith.addf %10, %15 : vector<8x128xf32>
    %17 = vector.extract_strided_slice %0 {offsets = [0, 2], sizes = [8, 1], strides = [1, 1]} : vector<8x4xf32> to vector<8x1xf32>
    %18 = vector.extract_strided_slice %1 {offsets = [2, 0], sizes = [1, 128], strides = [1, 1]} : vector<4x128xf32> to vector<1x128xf32>
    %19 = vector.broadcast %17 : vector<8x1xf32> to vector<8x128xf32>
    %20 = vector.broadcast %18 : vector<1x128xf32> to vector<8x128xf32>
    %21 = arith.mulf %19, %20 : vector<8x128xf32>
    %22 = arith.addf %16, %21 : vector<8x128xf32>
    %23 = vector.extract_strided_slice %0 {offsets = [0, 3], sizes = [8, 1], strides = [1, 1]} : vector<8x4xf32> to vector<8x1xf32>
    %24 = vector.extract_strided_slice %1 {offsets = [3, 0], sizes = [1, 128], strides = [1, 1]} : vector<4x128xf32> to vector<1x128xf32>
    %25 = vector.broadcast %23 : vector<8x1xf32> to vector<8x128xf32>
    %26 = vector.broadcast %24 : vector<1x128xf32> to vector<8x128xf32>
    %27 = arith.mulf %25, %26 : vector<8x128xf32>
    %28 = arith.addf %22, %27 : vector<8x128xf32>
    %cst = arith.constant 0.000000e+00 : f32
    %29 = vector.broadcast %cst : f32 to vector<8x128xf32>
    %30 = arith.maximumf %28, %29 : vector<8x128xf32>
    %c0_5 = arith.constant 0 : index
    %c0_6 = arith.constant 0 : index
    %31 = vector.load %arg4[%c0_5, %c0_6] : memref<128x8xf32, #tpu.memory_space<vmem>>, vector<128x8xf32>
    %cst_7 = arith.constant dense<0.000000e+00> : vector<8x8xf32>
    %32 = tpu.matmul %30, %31, %cst_7 {dimension_numbers = #tpu.dot_dimension_numbers<[1], [0], [0], [1], [0, 0, 1, 1], [], []>} : vector<8x128xf32>, vector<128x8xf32>, vector<8x8xf32> -> vector<8x8xf32>
    %c0_8 = arith.constant 0 : index
    %c0_9 = arith.constant 0 : index
    %33 = vector.load %arg5[%c0_8, %c0_9] : memref<1x8xf32, #tpu.memory_space<vmem>>, vector<1x8xf32>
    %34 = vector.broadcast %33 : vector<1x8xf32> to vector<8x8xf32>
    %35 = arith.addf %32, %34 : vector<8x8xf32>
    %36 = vector.extract_strided_slice %35 {offsets = [0, 0], sizes = [8, 1], strides = [1, 1]} : vector<8x8xf32> to vector<8x1xf32>
    %37 = vector.extract_strided_slice %35 {offsets = [0, 1], sizes = [8, 1], strides = [1, 1]} : vector<8x8xf32> to vector<8x1xf32>
    %38 = arith.subf %36, %37 : vector<8x1xf32>
    %cst_10 = arith.constant 0.000000e+00 : f32
    %39 = vector.broadcast %cst_10 : f32 to vector<8x1xf32>
    %40 = arith.subf %39, %38 : vector<8x1xf32>
    %41 = math.exp %40 : vector<8x1xf32>
    %cst_11 = arith.constant 1.000000e+00 : f32
    %42 = vector.broadcast %cst_11 : f32 to vector<8x1xf32>
    %43 = arith.addf %42, %41 : vector<8x1xf32>
    %cst_12 = arith.constant 1.000000e+00 : f32
    %44 = vector.broadcast %cst_12 : f32 to vector<8x1xf32>
    %45 = arith.divf %44, %43 : vector<8x1xf32>
    %46 = math.exp %38 : vector<8x1xf32>
    %cst_13 = arith.constant 1.000000e+00 : f32
    %47 = vector.broadcast %cst_13 : f32 to vector<8x1xf32>
    %48 = arith.addf %47, %46 : vector<8x1xf32>
    %cst_14 = arith.constant 1.000000e+00 : f32
    %49 = vector.broadcast %cst_14 : f32 to vector<8x1xf32>
    %50 = arith.divf %49, %48 : vector<8x1xf32>
    %51 = tpu.iota {dimensions = array<i32: 1>} : vector<8x8xi32>
    %c0_i32 = arith.constant 0 : i32
    %52 = vector.broadcast %c0_i32 : i32 to vector<8x8xi32>
    %53 = arith.cmpi eq, %51, %52 : vector<8x8xi32>
    %c1_i32 = arith.constant 1 : i32
    %54 = vector.broadcast %c1_i32 : i32 to vector<8x8xi32>
    %55 = arith.cmpi eq, %51, %54 : vector<8x8xi32>
    %56 = vector.shape_cast %50 : vector<8x1xf32> to vector<8x1xf32>
    %57 = vector.broadcast %56 : vector<8x1xf32> to vector<8x8xf32>
    %58 = arith.select %55, %57, %35 : vector<8x8xi1>, vector<8x8xf32>
    %59 = vector.shape_cast %45 : vector<8x1xf32> to vector<8x1xf32>
    %60 = vector.broadcast %59 : vector<8x1xf32> to vector<8x8xf32>
    %61 = arith.select %53, %60, %58 : vector<8x8xi1>, vector<8x8xf32>
    %c0_15 = arith.constant 0 : index
    %c0_16 = arith.constant 0 : index
    %62 = vector.load %arg6[%c0_15, %c0_16] : memref<8x8xf32, #tpu.memory_space<vmem>>, vector<8x8xf32>
    tpu.vector_store %arg6[%c0_15, %c0_16], %61 {strides = array<i32>} : memref<8x8xf32, #tpu.memory_space<vmem>>, vector<8x8xf32>,
    return
  }
  func.func @transform_0(%arg0: i32) -> (i32, i32) {
    %c0_i32 = arith.constant 0 : i32
    %c0_i32_0 = arith.constant 0 : i32
    return %arg0, %c0_i32 : i32, i32
  }
  func.func @transform_1(%arg0: i32) -> (i32, i32) {
    %c0_i32 = arith.constant 0 : i32
    %c0_i32_0 = arith.constant 0 : i32
    %c0_i32_1 = arith.constant 0 : i32
    return %c0_i32, %c0_i32_0 : i32, i32
  }
  func.func @transform_2(%arg0: i32) -> (i32, i32) {
    %c0_i32 = arith.constant 0 : i32
    %c0_i32_0 = arith.constant 0 : i32
    %c0_i32_1 = arith.constant 0 : i32
    return %c0_i32, %c0_i32_0 : i32, i32
  }
  func.func @transform_3(%arg0: i32) -> (i32, i32) {
    %c0_i32 = arith.constant 0 : i32
    %c0_i32_0 = arith.constant 0 : i32
    %c0_i32_1 = arith.constant 0 : i32
    return %c0_i32, %c0_i32_0 : i32, i32
  }
  func.func @transform_4(%arg0: i32) -> (i32, i32) {
    %c0_i32 = arith.constant 0 : i32
    %c0_i32_0 = arith.constant 0 : i32
    %c0_i32_1 = arith.constant 0 : i32
    return %c0_i32, %c0_i32_0 : i32, i32
  }
  func.func @transform_5(%arg0: i32) -> (i32, i32) {
    %c0_i32 = arith.constant 0 : i32
    %c0_i32_0 = arith.constant 0 : i32
    return %arg0, %c0_i32 : i32, i32
  }
}

</mosaic_0001>

<bundles_post_ra>
// kernel: policy_forward.1
= control target key start
LH: loop header
LB: loop body
LE: loop exit
PB: predicated region body
PF: predicated region fallthrough
CT: control target
= control target key end

     0   :  { %v277_v0 = vmov 0   ;;  %v278_v2 = vmov 2   ;;  %v279_v4 = vmov 0.0   ;;  %v280_v6 = vmov 1   ;;  %s377_s0 = inlined_call_operand.vmem [shape: f32[8,4], index: 0, kind: input, shape index: {}]   ;;  %s378_s3 = inlined_call_operand.vmem [shape: f32[128,8], index: 3, kind: input, shape index: {}]   ;;  %s379_s1 = inlined_call_operand.vmem [shape: f32[4,128], index: 1, kind: input, shape index: {}]   ;;  %s380_s2 = inlined_call_operand.vmem [shape: f32[1,128], index: 2, kind: input, shape index: {}]   ;;  %s381_s4 = inlined_call_operand.vmem [shape: f32[1,8], index: 4, kind: input, shape index: {}]   ;;  %s382_s5 = inlined_call_operand.vmem [shape: f32[8,8], index: 5, kind: output, shape index: {}]  }
   0x1   :  { %263 = vset.pattern.permute.xlu0 %v277_v0  ;;  %v20_v1 = vld [vmem:[%s377_s0] sm:$0xff]  ;;  %265 = vset.pattern.permute.xlu1 %v278_v2  ;;  %v86_v3 = vld [vmem:[%s378_s3 + $0x78] sm:$0xff]  ;;  %v85_v5 = vld [vmem:[%s378_s3 + $0x70] sm:$0xff]  ;;  %v281_v7 = vmov 3   ;;  %vm282_vm0 = vmmov 0   ;;  %v34_v22 = vlaneseq  ;;  %vm196_vm3 = vcmask 64512  }
   0x2   :  { %31 = vperm.xlu0 %263, %v20_v1   ;;  %51 = vperm.xlu1 %265, %v20_v1   ;;  %v84_v8 = vld [vmem:[%s378_s3 + $0x68] sm:$0xff]  ;;  %v83_v9 = vld [vmem:[%s378_s3 + $0x60] sm:$0xff]  ;;  %v82_v10 = vld [vmem:[%s378_s3 + $0x58] sm:$0xff] }
   0x3   :  { %221 = vmatprep.subr.mxu0 %v279_v4  ;;  %253 = vmatprep.mubr.msk.f32.mxu0 %vm282_vm0, %v279_v4  ;;  %v81_v11 = vld [vmem:[%s378_s3 + $0x50] sm:$0xff]  ;;  %v80_v12 = vld [vmem:[%s378_s3 + $0x48] sm:$0xff]  ;;  %v79_v13 = vld [vmem:[%s378_s3 + $0x40] sm:$0xff]  ;;  %v35_v23 = vshrl.u32 %v34_v22, 7  ;;  %v181_v62 = vand.u32 127, %v34_v22 }
   0x4   :  { %222 = vmatpush3.msra.mxu0 %v86_v3  ;;  %v78_v14 = vld [vmem:[%s378_s3 + $0x38] sm:$0xff]  ;;  %v77_v15 = vld [vmem:[%s378_s3 + $0x30] sm:$0xff]  ;;  %v76_v16 = vld [vmem:[%s378_s3 + $0x28] sm:$0xff] }
   0x5   :  { %223 = vmatprep.subr.mxu0 %v279_v4  ;;  %v75_v17 = vld [vmem:[%s378_s3 + $0x20] sm:$0xff]  ;;  %v74_v18 = vld [vmem:[%s378_s3 + $0x18] sm:$0xff]  ;;  %v73_v19 = vld [vmem:[%s378_s3 + $0x10] sm:$0xff]  ;;  %v36_v24 = vsub.s32 0, %v35_v23  ;;  %v46_v27 = vsub.s32 1, %v35_v23  ;;  %v56_v29 = vsub.s32 2, %v35_v23 }
   0x6   :  { %264 = vset.pattern.permute.xlu0 %v280_v6  ;;  %266 = vset.pattern.permute.xlu1 %v281_v7  ;;  %v72_v20 = vld [vmem:[%s378_s3 + $0x8] sm:$0xff]  ;;  %v71_v21 = vld [vmem:[%s378_s3] sm:$0xff]  ;;  %v66_v31 = vsub.s32 3, %v35_v23  ;;  %vm183_vm1 = vcmp.eq.s32.totalorder %v181_v62, 1  ;;  %vm182_vm2 = vcmp.eq.s32.totalorder %v181_v62, 0 }
   0x7   :  { %41 = vperm.xlu0 %264, %v20_v1   ;;  %61 = vperm.xlu1 %266, %v20_v1   ;;  %v21_v25 = vld [vmem:[%s379_s1] sm:$0xf] }
   0x8   :  { %224 = vmatpush3.msra.mxu0 %v85_v5  ;;  %v37_v26 = vrot.slane %v21_v25, %v36_v24  ;;  %v47_v33 = vrot.slane %v21_v25, %v46_v27  ;;  %v202_v34 = vld [vmem:[%s380_s2] ss:$0 sm:$0xff]  ;;  %v57_v35 = vrot.slane %v21_v25, %v56_v29  ;;  %v67_v36 = vrot.slane %v21_v25, %v66_v31  ;;  %s283_s2 = smov 127  }
   0x9   :  { %225 = vmatprep.subr.mxu0 %v279_v4  ;;  %v203_v47 = vld [vmem:[%s381_s4] ss:$0 sm:$0xff] }
   0xa   :  { %226 = vmatpush3.msra.mxu0 %v84_v8 }
   0xb   :  { %227 = vmatprep.subr.mxu0 %v279_v4  ;;  %267 = vset.pattern.permute.xlu0 %v277_v0 }
   0xc   :  { %228 = vmatpush3.msra.mxu0 %v83_v9  ;;  %268 = vset.pattern.permute.xlu1 %v277_v0 }
   0xd   :  { %229 = vmatprep.subr.mxu0 %v279_v4 }
   0xe   :  { %230 = vmatpush3.msra.mxu0 %v82_v10 }
   0xf   :  { %231 = vmatprep.subr.mxu0 %v279_v4 }
  0x10   :  { %232 = vmatpush3.msra.mxu0 %v81_v11 }
  0x11   :  { %233 = vmatprep.subr.mxu0 %v279_v4 }
  0x12   :  { %234 = vmatpush3.msra.mxu0 %v80_v12 }
  0x13   :  { %235 = vmatprep.subr.mxu0 %v279_v4 }
  0x14   :  { %236 = vmatpush3.msra.mxu0 %v79_v13 }
  0x15   :  { %237 = vmatprep.subr.mxu0 %v279_v4 }
  0x16   :  { %238 = vmatpush3.msra.mxu0 %v78_v14 }
  0x17   :  { %239 = vmatprep.subr.mxu0 %v279_v4 }
  0x18   :  { %240 = vmatpush3.msra.mxu0 %v77_v15 }
  0x19   :  { %241 = vmatprep.subr.mxu0 %v279_v4 }
  0x1a   :  { %242 = vmatpush3.msra.mxu0 %v76_v16 }
  0x1b   :  { %243 = vmatprep.subr.mxu0 %v279_v4 }
  0x1c   :  { %244 = vmatpush3.msra.mxu0 %v75_v17 }
  0x1d   :  { %245 = vmatprep.subr.mxu0 %v279_v4 }
  0x1e   :  { %246 = vmatpush3.msra.mxu0 %v74_v18 }
  0x1f   :  { %247 = vmatprep.subr.mxu0 %v279_v4 }
  0x20   :  { %248 = vmatpush3.msra.mxu0 %v73_v19 }
  0x21   :  { %249 = vmatprep.subr.mxu0 %v279_v4 }
  0x22   :  { %250 = vmatpush3.msra.mxu0 %v72_v20 }
  0x23   :  { %251 = vmatprep.subr.mxu0 %v279_v4 }
  0x24   :  { %252 = vmatpush3.msra.mxu0 %v71_v21 }
  0x7d   :  { %v32_v28 = vpop.permute.xlu0 %31  ;;  %v52_v30 = vpop.permute.xlu1 %51 }
  0x7e   :  { %v38_v32 = vmul.f32 %v37_v26, %v32_v28  ;;  %v58_v41 = vmul.f32 %v57_v35, %v52_v30 }
  0x80   :  { %v39_v39 = vadd.f32 %v202_v34, %v38_v32 }
  0x82   :  { %v42_v37 = vpop.permute.xlu0 %41  ;;  %v62_v38 = vpop.permute.xlu1 %61 }
  0x83   :  { %v48_v40 = vmul.f32 %v47_v33, %v42_v37  ;;  %v68_v43 = vmul.f32 %v67_v36, %v62_v38 }
  0x85   :  { %v49_v42 = vadd.f32 %v48_v40, %v39_v39 }
  0x87   :  { %v59_v44 = vadd.f32 %v58_v41, %v49_v42 }
  0x89   :  { %v69_v45 = vadd.f32 %v68_v43, %v59_v44 }
  0x8b   :  { %v70_v46 = vmax.f32 %v69_v45, 0.0 }
  0x8d   :  { %254 = vmatmul.mubr.f32.vlgmr.msra.gmra.mxu0 %v70_v46 }
 0x14d   :  { %v160_v48 = vpop.f32.mrf.mxu0 }
 0x14e   :  { %v161_v49 = vadd.f32 %v203_v47, %v160_v48 }
 0x14f   :  { %v255_v50 = vpop.f32.mrf.mxu0 }
 0x150   :  { %165 = vrot.lane.b32.xlu1 %v161_v49, %s283_s2 }
 0x1c2   :  { %v166_v51 = vpop.permute.xlu1 %165 }
 0x1c3   :  { %v168_v52 = vsub.f32 %v161_v49, %v166_v51 }
 0x1c5   :  { %v169_v53 = vsub.f32 0.0, %v168_v52  ;;  %v175_v54 = vmul.f32 1.442695, %v168_v52 }
 0x1c7   :  { %v170_v55 = vmul.f32 1.442695, %v169_v53  ;;  %269 = vpow2.f32 %v175_v54 }
 0x1c9   :  { %271 = vpow2.f32 %v170_v55 }
 0x1d4   :  { %v270_v56 = vpop.eup %269 }
 0x1d5   :  { %v177_v57 = vadd.f32 1.0, %v270_v56 }
 0x1d6   :  { %v272_v58 = vpop.eup %271 }
 0x1d7   :  { %v172_v59 = vadd.f32 1.0, %v272_v58  ;;  %273 = vrcp.f32 %v177_v57 }
 0x1d9   :  { %275 = vrcp.f32 %v172_v59 }
 0x1e4   :  { %v274_v60 = vpop.eup %273 }
 0x1e5   :  { %186 = vperm.xlu0 %267, %v274_v60  }
 0x1e6   :  { %v276_v61 = vpop.eup %275 }
 0x1e7   :  { %192 = vperm.xlu1 %268, %v276_v61  }
 0x260   :  { %v187_v63 = vpop.permute.xlu0 %186 }
 0x261   :  { %v189_v0 = vsel %vm183_vm1, %v187_v63, %v161_v49 }
 0x262   :  { %v193_v1 = vpop.permute.xlu1 %192 }
 0x263   :  { %v195_v2 = vsel %vm182_vm2, %v193_v1, %v189_v0 }
 0x264   :  { %197 = vst.msk [vmem:[%s382_s5] sm:$0xff] %vm196_vm3, %v195_v2 }

</bundles_post_ra>
